<compile_context>
chip_gen: v5e
topology: v5e:2x2
jax: 0.10.0
libtpu: 0.0.40
codegen_flags: <defaults>
</compile_context>

<pallas_src>
import math

import jax
import jax.numpy as jnp
from jax.experimental import pallas as pl
from jax.experimental.pallas import tpu as pltpu


def _round_up(x, m):
    return ((x + m - 1) // m) * m


def a2c_fused_kernel(x_ref, w1_ref, b1_ref, w2_ref, b2_ref, out_ref):
    x = x_ref[...]                                                    # (T, 32) f32
    # Fused actor+critic hidden layer: (T, 32) = (T, 32) @ (32, 32), f32 accum.
    h = jnp.dot(x, w1_ref[...], preferred_element_type=jnp.float32)
    h = jnp.maximum(h + b1_ref[...], 0.0)                             # bias + ReLU (VPU)
    # Fused output layer (block-diagonal W2): (T, 8) = (T, 32) @ (32, 8), f32.
    out = jnp.dot(h, w2_ref[...], preferred_element_type=jnp.float32)
    out_ref[...] = out + b2_ref[...]                                  # (T, 8) f32


def pack_params(params):
    """Fuse the 8 per-head params into (W1, b1, W2, b2) for the kernel.

    params: (wa1 (32,16), ba1 (1,16), wa2 (16,5), ba2 (1,5),
             wc1 (32,16), bc1 (1,16), wc2 (16,1), bc2 (1,1))
    """
    wa1, ba1, wa2, ba2, wc1, bc1, wc2, bc2 = params
    w1 = jnp.concatenate([wa1, wc1], axis=1).astype(jnp.float32)      # (32, 32)
    b1 = jnp.concatenate([ba1, bc1], axis=1).astype(jnp.float32)      # (1, 32)
    # Block-diagonal second layer, zero-padded to 8 output lanes.
    w2 = jnp.zeros((32, 8), jnp.float32)
    w2 = w2.at[:16, 0:5].set(wa2)                                     # actor  -> cols 0:5
    w2 = w2.at[16:, 5:6].set(wc2)                                     # critic -> col  5
    b2 = jnp.zeros((1, 8), jnp.float32)
    b2 = b2.at[:, 0:5].set(ba2)
    b2 = b2.at[:, 5:6].set(bc2)
    return w1, b1, w2, b2


def _choose_tile(B, tb):
    """Pick the per-grid-step batch tile.

    * Big tiles amortize the ~0.35us per-grid-step overhead.
    * When the batch is big enough, force >= 2 grid steps so the "parallel"
      batch axis can be split across v7x's two TensorCores.
    * Tile rows are a multiple of 16 (sublane-friendly) or equal to B, so the
      BlockSpec is legal for any batch size (no wrapper-side padding needed).
    """
    tb = max(16, _round_up(tb, 16))
    if B <= 16:
        return B                      # single block == full array dim (always legal)
    tile = _round_up(pl.cdiv(B, 2), 16)   # at least 2 grid steps
    return min(tile, tb)


def a2c_forward(state, packed_params, *, tb=16384):
    """state: (B, 32) float32. Returns (logits (B, 5), value (B, 1)) float32."""
    B = state.shape[0]
    w1, b1, w2, b2 = packed_params

    tile = _choose_tile(B, tb)
    grid = (pl.cdiv(B, tile),)

    out = pl.pallas_call(
        a2c_fused_kernel,
        out_shape=jax.ShapeDtypeStruct((B, 8), jnp.float32),
        grid_spec=pltpu.PrefetchScalarGridSpec(
            num_scalar_prefetch=0,
            grid=grid,
            in_specs=[
                pl.BlockSpec((tile, 32), lambda i: (i, 0)),   # state tile (streamed f32)
                pl.BlockSpec((32, 32), lambda i: (0, 0)),     # W1 (VMEM-resident)
                pl.BlockSpec((1, 32), lambda i: (0, 0)),      # b1
                pl.BlockSpec((32, 8), lambda i: (0, 0)),      # W2
                pl.BlockSpec((1, 8), lambda i: (0, 0)),       # b2
            ],
            out_specs=pl.BlockSpec((tile, 8), lambda i: (i, 0)),
        ),
        compiler_params=pltpu.CompilerParams(
            dimension_semantics=("parallel",)),
    )(state, w1, b1, w2, b2)

    logits = out[:, 0:5]
    value = out[:, 5:6]
    return logits, value


def init_linear(key, fan_in, fan_out):
    """Deterministic PyTorch-style (Kaiming-uniform-ish) init.

    Returns W of shape (fan_in, fan_out) and b of shape (1, fan_out)."""
    kw, kb = jax.random.split(key)
    bound = 1.0 / math.sqrt(fan_in)
    w = jax.random.uniform(kw, (fan_in, fan_out), jnp.float32, -bound, bound)
    b = jax.random.uniform(kb, (1, fan_out), jnp.float32, -bound, bound)
    return w, b


def jax_reference(state, params):
    """Pure-JAX f32 reference matching the PyTorch forward."""
    wa1, ba1, wa2, ba2, wc1, bc1, wc2, bc2 = params
    ha = jnp.maximum(state @ wa1 + ba1, 0.0)
    logits = ha @ wa2 + ba2
    hc = jnp.maximum(state @ wc1 + bc1, 0.0)
    value = hc @ wc2 + bc2
    return logits, value


if __name__ == "__main__":
    key = jax.random.PRNGKey(0)
    k_state, k_a1, k_a2, k_c1, k_c2, k_big = jax.random.split(key, 6)

    wa1, ba1 = init_linear(k_a1, 32, 16)   # actor Linear(32, 16)
    wa2, ba2 = init_linear(k_a2, 16, 5)    # actor Linear(16, 5)
    wc1, bc1 = init_linear(k_c1, 32, 16)   # critic Linear(32, 16)
    wc2, bc2 = init_linear(k_c2, 16, 1)    # critic Linear(16, 1)
    params = (wa1, ba1, wa2, ba2, wc1, bc1, wc2, bc2)
    packed = pack_params(params)

    # Tolerance is bounded by the MXU's default (bf16-pass) f32 matmul
    # precision only; there is no explicit quantization anywhere anymore.
    TOL = dict(atol=2e-2, rtol=2e-2)

    # --- small batch (per-env-step inference shape): single block, grid=(1,) ---
    B = 8
    state = jax.random.normal(k_state, (B, 32), jnp.float32)
    logits, value = jax.block_until_ready(a2c_forward(state, packed))
    ref_logits, ref_value = jax_reference(state, params)
    assert logits.shape == (B, 5) and value.shape == (B, 1)
    assert jnp.allclose(logits, ref_logits, **TOL)
    assert jnp.allclose(value, ref_value, **TOL)

    # --- non-multiple-of-tile batch: 2-step grid (v7x split) + masked last block ---
    B2 = 300
    state2 = jax.random.normal(k_big, (B2, 32), jnp.float32)
    logits2, value2 = jax.block_until_ready(a2c_forward(state2, packed))
    ref_logits2, ref_value2 = jax_reference(state2, params)
    assert logits2.shape == (B2, 5) and value2.shape == (B2, 1)
    assert jnp.allclose(logits2, ref_logits2, **TOL)
    assert jnp.allclose(value2, ref_value2, **TOL)

    # --- small explicit tile: multi-step grid (grid=3) over the same batch ---
    logits3, value3 = jax.block_until_ready(a2c_forward(state2, packed, tb=128))
    assert jnp.allclose(logits3, ref_logits2, **TOL)
    assert jnp.allclose(value3, ref_value2, **TOL)

    print("KERNEL_OK")
</pallas_src>

<mosaic_0001>
module attributes {stable_mosaic.version = 11 : i64} {
  func.func @a2c_fused_kernel(%arg0: i32, %arg1: memref<8x32xf32, #tpu.memory_space<vmem>>, %arg2: memref<32x32xf32, #tpu.memory_space<vmem>>, %arg3: memref<1x32xf32, #tpu.memory_space<vmem>>, %arg4: memref<32x8xf32, #tpu.memory_space<vmem>>, %arg5: memref<1x8xf32, #tpu.memory_space<vmem>>, %arg6: memref<8x8xf32, #tpu.memory_space<vmem>>) attributes {dimension_semantics = [#tpu.dimension_semantics<parallel>], iteration_bounds = array<i64: 1>, scalar_prefetch = 0 : i64, scratch_operands = 0 : i64, tpu.core_type = #tpu.core_type<tc>, window_params = [{transform_indices = @transform_0, window_bounds = array<i64: 8, 32>}, {pipeline_mode = #tpu.pipeline_mode<synchronous>, transform_indices = @transform_1, window_bounds = array<i64: 32, 32>}, {pipeline_mode = #tpu.pipeline_mode<synchronous>, transform_indices = @transform_2, window_bounds = array<i64: 1, 32>}, {pipeline_mode = #tpu.pipeline_mode<synchronous>, transform_indices = @transform_3, window_bounds = array<i64: 32, 8>}, {pipeline_mode = #tpu.pipeline_mode<synchronous>, transform_indices = @transform_4, window_bounds = array<i64: 1, 8>}, {transform_indices = @transform_5, window_bounds = array<i64: 8, 8>}]} {
    %c0 = arith.constant 0 : index
    %c0_0 = arith.constant 0 : index
    %0 = vector.load %arg1[%c0, %c0_0] : memref<8x32xf32, #tpu.memory_space<vmem>>, vector<8x32xf32>
    %c0_1 = arith.constant 0 : index
    %c0_2 = arith.constant 0 : index
    %1 = vector.load %arg2[%c0_1, %c0_2] : memref<32x32xf32, #tpu.memory_space<vmem>>, vector<32x32xf32>
    %cst = arith.constant dense<0.000000e+00> : vector<8x32xf32>
    %2 = tpu.matmul %0, %1, %cst {dimension_numbers = #tpu.dot_dimension_numbers<[1], [0], [0], [1], [0, 0, 1, 1], [], []>} : vector<8x32xf32>, vector<32x32xf32>, vector<8x32xf32> -> vector<8x32xf32>
    %c0_3 = arith.constant 0 : index
    %c0_4 = arith.constant 0 : index
    %3 = vector.load %arg3[%c0_3, %c0_4] : memref<1x32xf32, #tpu.memory_space<vmem>>, vector<1x32xf32>
    %4 = vector.broadcast %3 : vector<1x32xf32> to vector<8x32xf32>
    %5 = arith.addf %2, %4 : vector<8x32xf32>
    %cst_5 = arith.constant 0.000000e+00 : f32
    %6 = vector.broadcast %cst_5 : f32 to vector<8x32xf32>
    %7 = arith.maximumf %5, %6 : vector<8x32xf32>
    %c0_6 = arith.constant 0 : index
    %c0_7 = arith.constant 0 : index
    %8 = vector.load %arg4[%c0_6, %c0_7] : memref<32x8xf32, #tpu.memory_space<vmem>>, vector<32x8xf32>
    %cst_8 = arith.constant dense<0.000000e+00> : vector<8x8xf32>
    %9 = tpu.matmul %7, %8, %cst_8 {dimension_numbers = #tpu.dot_dimension_numbers<[1], [0], [0], [1], [0, 0, 1, 1], [], []>} : vector<8x32xf32>, vector<32x8xf32>, vector<8x8xf32> -> vector<8x8xf32>
    %c0_9 = arith.constant 0 : index
    %c0_10 = arith.constant 0 : index
    %10 = vector.load %arg5[%c0_9, %c0_10] : memref<1x8xf32, #tpu.memory_space<vmem>>, vector<1x8xf32>
    %11 = vector.broadcast %10 : vector<1x8xf32> to vector<8x8xf32>
    %12 = arith.addf %9, %11 : vector<8x8xf32>
    %c0_11 = arith.constant 0 : index
    %c0_12 = arith.constant 0 : index
    %13 = vector.load %arg6[%c0_11, %c0_12] : memref<8x8xf32, #tpu.memory_space<vmem>>, vector<8x8xf32>
    tpu.vector_store %arg6[%c0_11, %c0_12], %12 {strides = array<i32>} : memref<8x8xf32, #tpu.memory_space<vmem>>, vector<8x8xf32>,
    return
  }
  func.func @transform_0(%arg0: i32) -> (i32, i32) {
    %c0_i32 = arith.constant 0 : i32
    %c0_i32_0 = arith.constant 0 : i32
    return %arg0, %c0_i32 : i32, i32
  }
  func.func @transform_1(%arg0: i32) -> (i32, i32) {
    %c0_i32 = arith.constant 0 : i32
    %c0_i32_0 = arith.constant 0 : i32
    %c0_i32_1 = arith.constant 0 : i32
    return %c0_i32, %c0_i32_0 : i32, i32
  }
  func.func @transform_2(%arg0: i32) -> (i32, i32) {
    %c0_i32 = arith.constant 0 : i32
    %c0_i32_0 = arith.constant 0 : i32
    %c0_i32_1 = arith.constant 0 : i32
    return %c0_i32, %c0_i32_0 : i32, i32
  }
  func.func @transform_3(%arg0: i32) -> (i32, i32) {
    %c0_i32 = arith.constant 0 : i32
    %c0_i32_0 = arith.constant 0 : i32
    %c0_i32_1 = arith.constant 0 : i32
    return %c0_i32, %c0_i32_0 : i32, i32
  }
  func.func @transform_4(%arg0: i32) -> (i32, i32) {
    %c0_i32 = arith.constant 0 : i32
    %c0_i32_0 = arith.constant 0 : i32
    %c0_i32_1 = arith.constant 0 : i32
    return %c0_i32, %c0_i32_0 : i32, i32
  }
  func.func @transform_5(%arg0: i32) -> (i32, i32) {
    %c0_i32 = arith.constant 0 : i32
    %c0_i32_0 = arith.constant 0 : i32
    return %arg0, %c0_i32 : i32, i32
  }
}

</mosaic_0001>

<bundles_post_ra>
// kernel: tpu_custom_call.1
= control target key start
LH: loop header
LB: loop body
LE: loop exit
PB: predicated region body
PF: predicated region fallthrough
CT: control target
= control target key end

     0   :  { %s202_s0 = inlined_call_operand.vmem [shape: f32[8,32], index: 0, kind: input, shape index: {}]   ;;  %s203_s1 = inlined_call_operand.vmem [shape: f32[32,32], index: 1, kind: input, shape index: {}]   ;;  %s204_s2 = inlined_call_operand.vmem [shape: f32[1,32], index: 2, kind: input, shape index: {}]   ;;  %s205_s3 = inlined_call_operand.vmem [shape: f32[32,8], index: 3, kind: input, shape index: {}]   ;;  %s206_s4 = inlined_call_operand.vmem [shape: f32[1,8], index: 4, kind: input, shape index: {}]   ;;  %s207_s5 = inlined_call_operand.hbm [shape: f32[8,8], index: 5, kind: output, shape index: {}]  }
   0x1   :  { %v25_v0 = vld [vmem:[%s203_s1 + $0x18] sm:$0xff]  ;;  %v24_v1 = vld [vmem:[%s203_s1 + $0x10] sm:$0xff]  ;;  %v23_v3 = vld [vmem:[%s203_s1 + $0x8] sm:$0xff] }
   0x2   :  { %46 = vmatpush.msra.mxu0 %v25_v0  ;;  %v58_v2 = vld [vmem:[%s205_s3 + $0x18] sm:$0xff] }
   0x3   :  { %78 = vmatpush.msra.mxu1 %v58_v2 }
   0x4   :  { %47 = vmatpush.msra.mxu0 %v24_v1 }
   0x5   :  { %10 = vsyncpa [#allocation3], 0  ;;  %v22_v4 = vld [vmem:[%s203_s1] sm:$0xff]  ;;  %vm30_vm0 = vcmask 261120   ;;  %v57_v6 = vld [vmem:[%s205_s3 + $0x10] sm:$0xff]  ;;  %s135_s13 = smov [#allocation2]  }
   0x6   :  { %48 = vmatpush.msra.mxu0 %v23_v3  ;;  %v21_v5 = vld [vmem:[%s202_s0] sm:$0xff]  ;;  %79 = vmatpush.msra.mxu1 %v57_v6  ;;  %v56_v7 = vld [vmem:[%s205_s3 + $0x8] sm:$0xff]  ;;  %s93_s14 = sshll.u32 %s135_s13, 4  ;;  %s95_s17 = sshll.u32 %s207_s5, 4  ;;  %vm86_vm1 = vcmask 64512   ;;  %s94_s14 = int_to_ptr.vmem [resolvable:$true] %s93_s14  ;;  %s96_s17 = int_to_ptr.hbm [resolvable:$true] %s95_s17 }
   0x7   :  { %v55_v8 = vld [vmem:[%s205_s3] sm:$0xff] }
   0x8   :  { %49 = vmatpush.msra.mxu0 %v22_v4  ;;  %80 = vmatpush.msra.mxu1 %v56_v7  ;;  %v107_v9 = vld [vmem:[%s204_s2] ss:$0 sm:$0xff] }
   0x9   :  { %104 = vmatmul.msk.f32.vlgmr.msra.gmra.mxu0 %vm30_vm0, %v21_v5  ;;  %v108_v13 = vld [vmem:[%s206_s4] ss:$0 sm:$0xff] }
   0xa   :  { %81 = vmatpush.msra.mxu1 %v55_v8 }
  0x86   :  { %v51_v10 = vpop.f32.mrf.mxu0 }
  0x87   :  { %v52_v11 = vadd.f32 %v107_v9, %v51_v10 }
  0x89   :  { %v54_v12 = vmax.f32 %v52_v11, 0.0 }
  0x8b   :  { %105 = vmatmul.msk.f32.vlgmr.msra.gmra.mxu1 %vm30_vm0, %v54_v12 }
 0x108   :  { %v83_v14 = vpop.f32.mrf.mxu1 }
 0x109   :  { %v84_v15 = vadd.f32 %v108_v13, %v83_v14 }
 0x10b   :  { %87 = vst.msk [vmem:[#allocation2] sm:$0xff] %vm86_vm1, %v84_v15 }
 0x10c   :  { %98 = dma.vmem_to_hbm [thread:$0]  %s94_s14, 128, %s96_s17, [#allocation3]  }
 0x10d   :  { %133 = dma.done.wait [#allocation3], 128  }
 0x10e   :  { %134 = vsyncadd [#allocation3], 4294967168 }
 0x10f   :  { %103 = vsyncpa [#allocation3], 1 }

</bundles_post_ra>
